<compile_context>
chip_gen: v6e
topology: v6e:2x2x1
jax: 0.10.0
libtpu: 0.0.40
codegen_flags: <defaults>
</compile_context>

<pallas_src>
import jax
import jax.numpy as jnp
from jax.experimental import pallas as pl
from jax.experimental.pallas import tpu as pltpu

OUT_WIDTH = 128        # lane-dense padded output width (policy lanes + value lane)
VALUE_LANE = 64        # lane of the padded output / fused head that holds the value
HEAD_WIDTH = 128       # padded width of the fused (policy_hidden | value) head
L1_WIDTH = 128         # first hidden layer width (matches nn.Linear(hidden, 128))
MAX_BATCH_TILE = 512   # multiple of 256 -> fills v6e/v7x 256-wide MXU; fine on v5e


def _predictions_kernel(x_ref, w1_ref, b1_ref, wpv_ref, bpv_ref,
                        wpol_ref, bpol_ref, vmask_ref, out_ref):
    x = x_ref[...]

    # l1 + relu : (TB, hidden) @ (hidden, 128)
    h = jnp.dot(x, w1_ref[...], preferred_element_type=jnp.float32) + b1_ref[...]
    h = jnp.maximum(h, 0.0)

    # Fused policy_hidden (cols 0..63) + value head (col VALUE_LANE): one MXU pass.
    pv = jnp.dot(h, wpv_ref[...], preferred_element_type=jnp.float32) + bpv_ref[...]

    # ReLU'd fused head feeds the final policy matmul. Rows >= 64 of wpol_pad are
    # zero, so the (relu'd) value column contributes nothing to the logits.
    p = jnp.maximum(pv, 0.0)

    # Policy logits, already sharpened (x2 folded into wpol_pad / bpol_pad).
    # Lanes >= action_size and the value lane are exactly zero by construction.
    logits = jnp.dot(p, wpol_ref[...], preferred_element_type=jnp.float32) + bpol_ref[...]

    # Single lane-dense unmasked store: policy in lanes [0, action_size),
    # tanh(value) injected at VALUE_LANE via the precomputed one-hot mask
    # (no per-call iota / integer compare — pure EUP tanh + VPU fma).
    out_ref[...] = logits + vmask_ref[...] * jnp.tanh(pv)


def _batch_tiling(batch):
    if batch <= MAX_BATCH_TILE:
        return batch, 1
    return MAX_BATCH_TILE, pl.cdiv(batch, MAX_BATCH_TILE)


@jax.jit
def predictions_net_slab(x, fused):
    """Forward pass. x: (B, hidden_size) f32.

    Returns the lane-dense (B, 128) f32 slab:
      lanes [0, action_size) = sharpened policy logits, lane VALUE_LANE = tanh(value).
    Slice with `unpack_predictions` only where actually consumed.
    """
    B, hidden = x.shape
    tb, steps = _batch_tiling(B)
    const = lambda i: (0, 0)   # weights DMA'd once, VMEM-resident across steps

    grid_spec = pl.GridSpec(
        grid=(steps,),
        in_specs=[
            pl.BlockSpec((tb, hidden), lambda i: (i, 0)),
            pl.BlockSpec(fused["w1"].shape, const),
            pl.BlockSpec(fused["b1"].shape, const),
            pl.BlockSpec(fused["wpv"].shape, const),
            pl.BlockSpec(fused["bpv"].shape, const),
            pl.BlockSpec(fused["wpol_pad"].shape, const),
            pl.BlockSpec(fused["bpol_pad"].shape, const),
            pl.BlockSpec(fused["vmask"].shape, const),
        ],
        out_specs=pl.BlockSpec((tb, OUT_WIDTH), lambda i: (i, 0)),
    )

    return pl.pallas_call(
        _predictions_kernel,
        out_shape=jax.ShapeDtypeStruct((B, OUT_WIDTH), jnp.float32),
        grid_spec=grid_spec,
        compiler_params=pltpu.CompilerParams(
            dimension_semantics=("parallel",)),   # v7x: 2 TCs split the batch
    )(x, fused["w1"], fused["b1"], fused["wpv"], fused["bpv"],
      fused["wpol_pad"], fused["bpol_pad"], fused["vmask"])


def unpack_predictions(slab, action_size):
    """Consumer-side slicing of the lane-dense slab (kept outside the kernel
    program so the kernel emits a single unmasked lane-dense store)."""
    policy = slab[:, :action_size]
    value = slab[:, VALUE_LANE:VALUE_LANE + 1]
    return policy, value


def prepare_fused_params(params, action_size):
    """One-time packing of raw Linear weights into the fused, lane-dense layout
    consumed by the kernel (temperature x2 folded in, one-hot value mask)."""
    assert action_size <= VALUE_LANE, "value lane would collide with policy lanes"

    wp, bp = params["wp"], params["bp"]          # (128, 64), (1, 64)
    wv, bv = params["wv"], params["bv"]          # (128, 1),  (1, 1)
    wpol, bpol = params["wpol"], params["bpol"]  # (64, A),   (1, A)

    wpv = jnp.zeros((L1_WIDTH, HEAD_WIDTH), jnp.float32)
    wpv = wpv.at[:, :64].set(wp).at[:, VALUE_LANE:VALUE_LANE + 1].set(wv)
    bpv = jnp.zeros((1, HEAD_WIDTH), jnp.float32)
    bpv = bpv.at[:, :64].set(bp).at[:, VALUE_LANE:VALUE_LANE + 1].set(bv)

    wpol_pad = jnp.zeros((HEAD_WIDTH, OUT_WIDTH), jnp.float32)
    wpol_pad = wpol_pad.at[:64, :action_size].set(wpol * 2.0)   # fold /0.5
    bpol_pad = jnp.zeros((1, OUT_WIDTH), jnp.float32)
    bpol_pad = bpol_pad.at[:, :action_size].set(bpol * 2.0)

    vmask = jnp.zeros((1, OUT_WIDTH), jnp.float32).at[:, VALUE_LANE].set(1.0)

    return {"w1": params["w1"], "b1": params["b1"],
            "wpv": wpv, "bpv": bpv,
            "wpol_pad": wpol_pad, "bpol_pad": bpol_pad,
            "vmask": vmask}


def init_params(key, hidden_size, action_size):
    """Deterministic PyTorch-Linear-style init (uniform +-1/sqrt(fan_in))."""
    def linear(k, fan_in, fan_out):
        kw, kb = jax.random.split(k)
        bound = 1.0 / jnp.sqrt(fan_in)
        w = jax.random.uniform(kw, (fan_in, fan_out), jnp.float32, -bound, bound)
        b = jax.random.uniform(kb, (1, fan_out), jnp.float32, -bound, bound)
        return w, b

    k1, k2, k3, k4 = jax.random.split(key, 4)
    w1, b1 = linear(k1, hidden_size, L1_WIDTH)
    wp, bp = linear(k2, L1_WIDTH, 64)
    wpol, bpol = linear(k3, 64, action_size)
    wv, bv = linear(k4, L1_WIDTH, 1)
    return {"w1": w1, "b1": b1, "wp": wp, "bp": bp,
            "wpol": wpol, "bpol": bpol, "wv": wv, "bv": bv}


def _reference(x, params):
    h = jax.nn.relu(x @ params["w1"] + params["b1"])
    p = jax.nn.relu(h @ params["wp"] + params["bp"])
    logits = (p @ params["wpol"] + params["bpol"]) / 0.5
    value = jnp.tanh(h @ params["wv"] + params["bv"])
    return logits, value


if __name__ == "__main__":
    key = jax.random.PRNGKey(0)
    k_param, k_x = jax.random.split(key)

    batch = 8            # NOTE: launch-bound at this size; batch hundreds+ of
    hidden_size = 32     # MCTS positions per call for real workloads (the batch
    action_size = 9      # grid then pipelines 512-row tiles across steps/cores).

    params = init_params(k_param, hidden_size, action_size)
    fused = prepare_fused_params(params, action_size)
    x = jax.random.normal(k_x, (batch, hidden_size), jnp.float32)

    slab = predictions_net_slab(x, fused)
    jax.block_until_ready(slab)
    logits, value = unpack_predictions(slab, action_size)

    ref_logits, ref_value = _reference(x, params)
    assert slab.shape == (batch, OUT_WIDTH)
    assert logits.shape == (batch, action_size)
    assert value.shape == (batch, 1)
    assert jnp.allclose(logits, ref_logits, atol=1e-4, rtol=1e-4)
    assert jnp.allclose(value, ref_value, atol=1e-4, rtol=1e-4)

    print("KERNEL_OK")
</pallas_src>

<mosaic_0001>
module attributes {stable_mosaic.version = 11 : i64} {
  func.func @_predictions_kernel(%arg0: i32, %arg1: memref<8x32xf32, #tpu.memory_space<vmem>>, %arg2: memref<32x128xf32, #tpu.memory_space<vmem>>, %arg3: memref<1x128xf32, #tpu.memory_space<vmem>>, %arg4: memref<128x128xf32, #tpu.memory_space<vmem>>, %arg5: memref<1x128xf32, #tpu.memory_space<vmem>>, %arg6: memref<128x128xf32, #tpu.memory_space<vmem>>, %arg7: memref<1x128xf32, #tpu.memory_space<vmem>>, %arg8: memref<1x128xf32, #tpu.memory_space<vmem>>, %arg9: memref<8x128xf32, #tpu.memory_space<vmem>>) attributes {dimension_semantics = [#tpu.dimension_semantics<parallel>], iteration_bounds = array<i64: 1>, scalar_prefetch = 0 : i64, scratch_operands = 0 : i64, tpu.core_type = #tpu.core_type<tc>, window_params = [{transform_indices = @transform_0, window_bounds = array<i64: 8, 32>}, {pipeline_mode = #tpu.pipeline_mode<synchronous>, transform_indices = @transform_1, window_bounds = array<i64: 32, 128>}, {pipeline_mode = #tpu.pipeline_mode<synchronous>, transform_indices = @transform_2, window_bounds = array<i64: 1, 128>}, {pipeline_mode = #tpu.pipeline_mode<synchronous>, transform_indices = @transform_3, window_bounds = array<i64: 128, 128>}, {pipeline_mode = #tpu.pipeline_mode<synchronous>, transform_indices = @transform_4, window_bounds = array<i64: 1, 128>}, {pipeline_mode = #tpu.pipeline_mode<synchronous>, transform_indices = @transform_5, window_bounds = array<i64: 128, 128>}, {pipeline_mode = #tpu.pipeline_mode<synchronous>, transform_indices = @transform_6, window_bounds = array<i64: 1, 128>}, {pipeline_mode = #tpu.pipeline_mode<synchronous>, transform_indices = @transform_7, window_bounds = array<i64: 1, 128>}, {transform_indices = @transform_8, window_bounds = array<i64: 8, 128>}]} {
    %c0 = arith.constant 0 : index
    %c0_0 = arith.constant 0 : index
    %0 = vector.load %arg1[%c0, %c0_0] : memref<8x32xf32, #tpu.memory_space<vmem>>, vector<8x32xf32>
    %c0_1 = arith.constant 0 : index
    %c0_2 = arith.constant 0 : index
    %1 = vector.load %arg2[%c0_1, %c0_2] : memref<32x128xf32, #tpu.memory_space<vmem>>, vector<32x128xf32>
    %cst = arith.constant dense<0.000000e+00> : vector<8x128xf32>
    %2 = tpu.matmul %0, %1, %cst {dimension_numbers = #tpu.dot_dimension_numbers<[1], [0], [0], [1], [0, 0, 1, 1], [], []>} : vector<8x32xf32>, vector<32x128xf32>, vector<8x128xf32> -> vector<8x128xf32>
    %c0_3 = arith.constant 0 : index
    %c0_4 = arith.constant 0 : index
    %3 = vector.load %arg3[%c0_3, %c0_4] : memref<1x128xf32, #tpu.memory_space<vmem>>, vector<1x128xf32>
    %4 = vector.broadcast %3 : vector<1x128xf32> to vector<8x128xf32>
    %5 = arith.addf %2, %4 : vector<8x128xf32>
    %cst_5 = arith.constant 0.000000e+00 : f32
    %6 = vector.broadcast %cst_5 : f32 to vector<8x128xf32>
    %7 = arith.maximumf %5, %6 : vector<8x128xf32>
    %c0_6 = arith.constant 0 : index
    %c0_7 = arith.constant 0 : index
    %8 = vector.load %arg4[%c0_6, %c0_7] : memref<128x128xf32, #tpu.memory_space<vmem>>, vector<128x128xf32>
    %cst_8 = arith.constant dense<0.000000e+00> : vector<8x128xf32>
    %9 = tpu.matmul %7, %8, %cst_8 {dimension_numbers = #tpu.dot_dimension_numbers<[1], [0], [0], [1], [0, 0, 1, 1], [], []>} : vector<8x128xf32>, vector<128x128xf32>, vector<8x128xf32> -> vector<8x128xf32>
    %c0_9 = arith.constant 0 : index
    %c0_10 = arith.constant 0 : index
    %10 = vector.load %arg5[%c0_9, %c0_10] : memref<1x128xf32, #tpu.memory_space<vmem>>, vector<1x128xf32>
    %11 = vector.broadcast %10 : vector<1x128xf32> to vector<8x128xf32>
    %12 = arith.addf %9, %11 : vector<8x128xf32>
    %cst_11 = arith.constant 0.000000e+00 : f32
    %13 = vector.broadcast %cst_11 : f32 to vector<8x128xf32>
    %14 = arith.maximumf %12, %13 : vector<8x128xf32>
    %c0_12 = arith.constant 0 : index
    %c0_13 = arith.constant 0 : index
    %15 = vector.load %arg6[%c0_12, %c0_13] : memref<128x128xf32, #tpu.memory_space<vmem>>, vector<128x128xf32>
    %cst_14 = arith.constant dense<0.000000e+00> : vector<8x128xf32>
    %16 = tpu.matmul %14, %15, %cst_14 {dimension_numbers = #tpu.dot_dimension_numbers<[1], [0], [0], [1], [0, 0, 1, 1], [], []>} : vector<8x128xf32>, vector<128x128xf32>, vector<8x128xf32> -> vector<8x128xf32>
    %c0_15 = arith.constant 0 : index
    %c0_16 = arith.constant 0 : index
    %17 = vector.load %arg7[%c0_15, %c0_16] : memref<1x128xf32, #tpu.memory_space<vmem>>, vector<1x128xf32>
    %18 = vector.broadcast %17 : vector<1x128xf32> to vector<8x128xf32>
    %19 = arith.addf %16, %18 : vector<8x128xf32>
    %c0_17 = arith.constant 0 : index
    %c0_18 = arith.constant 0 : index
    %20 = vector.load %arg8[%c0_17, %c0_18] : memref<1x128xf32, #tpu.memory_space<vmem>>, vector<1x128xf32>
    %21 = math.tanh %12 : vector<8x128xf32>
    %22 = vector.broadcast %20 : vector<1x128xf32> to vector<8x128xf32>
    %23 = arith.mulf %22, %21 : vector<8x128xf32>
    %24 = arith.addf %19, %23 : vector<8x128xf32>
    %c0_19 = arith.constant 0 : index
    %c0_20 = arith.constant 0 : index
    %25 = vector.load %arg9[%c0_19, %c0_20] : memref<8x128xf32, #tpu.memory_space<vmem>>, vector<8x128xf32>
    tpu.vector_store %arg9[%c0_19, %c0_20], %24 {strides = array<i32>} : memref<8x128xf32, #tpu.memory_space<vmem>>, vector<8x128xf32>,
    return
  }
  func.func @transform_0(%arg0: i32) -> (i32, i32) {
    %c0_i32 = arith.constant 0 : i32
    %c0_i32_0 = arith.constant 0 : i32
    return %arg0, %c0_i32 : i32, i32
  }
  func.func @transform_1(%arg0: i32) -> (i32, i32) {
    %c0_i32 = arith.constant 0 : i32
    %c0_i32_0 = arith.constant 0 : i32
    %c0_i32_1 = arith.constant 0 : i32
    return %c0_i32, %c0_i32_0 : i32, i32
  }
  func.func @transform_2(%arg0: i32) -> (i32, i32) {
    %c0_i32 = arith.constant 0 : i32
    %c0_i32_0 = arith.constant 0 : i32
    %c0_i32_1 = arith.constant 0 : i32
    return %c0_i32, %c0_i32_0 : i32, i32
  }
  func.func @transform_3(%arg0: i32) -> (i32, i32) {
    %c0_i32 = arith.constant 0 : i32
    %c0_i32_0 = arith.constant 0 : i32
    %c0_i32_1 = arith.constant 0 : i32
    return %c0_i32, %c0_i32_0 : i32, i32
  }
  func.func @transform_4(%arg0: i32) -> (i32, i32) {
    %c0_i32 = arith.constant 0 : i32
    %c0_i32_0 = arith.constant 0 : i32
    %c0_i32_1 = arith.constant 0 : i32
    return %c0_i32, %c0_i32_0 : i32, i32
  }
  func.func @transform_5(%arg0: i32) -> (i32, i32) {
    %c0_i32 = arith.constant 0 : i32
    %c0_i32_0 = arith.constant 0 : i32
    %c0_i32_1 = arith.constant 0 : i32
    return %c0_i32, %c0_i32_0 : i32, i32
  }
  func.func @transform_6(%arg0: i32) -> (i32, i32) {
    %c0_i32 = arith.constant 0 : i32
    %c0_i32_0 = arith.constant 0 : i32
    %c0_i32_1 = arith.constant 0 : i32
    return %c0_i32, %c0_i32_0 : i32, i32
  }
  func.func @transform_7(%arg0: i32) -> (i32, i32) {
    %c0_i32 = arith.constant 0 : i32
    %c0_i32_0 = arith.constant 0 : i32
    %c0_i32_1 = arith.constant 0 : i32
    return %c0_i32, %c0_i32_0 : i32, i32
  }
  func.func @transform_8(%arg0: i32) -> (i32, i32) {
    %c0_i32 = arith.constant 0 : i32
    %c0_i32_0 = arith.constant 0 : i32
    return %arg0, %c0_i32 : i32, i32
  }
}

</mosaic_0001>

<bundles_post_ra>
// kernel: predictions_net_slab.1
= control target key start
LH: loop header
LB: loop body
LE: loop exit
PB: predicated region body
PF: predicated region fallthrough
CT: control target
= control target key end

     0   :  { %13 = vsyncpa [#allocation3], 0  ;;  %s761_s0 = inlined_call_operand.hbm [shape: f32[8,32], index: 0, kind: input, shape index: {}]   ;;  %s762_s1 = inlined_call_operand.hbm [shape: f32[32,128], index: 1, kind: input, shape index: {}]   ;;  %s763_s2 = inlined_call_operand.vmem [shape: f32[1,128], index: 2, kind: input, shape index: {}]   ;;  %s764_s3 = inlined_call_operand.hbm [shape: f32[128,128], index: 3, kind: input, shape index: {}]   ;;  %s765_s4 = inlined_call_operand.vmem [shape: f32[1,128], index: 4, kind: input, shape index: {}]   ;;  %s766_s5 = inlined_call_operand.hbm [shape: f32[128,128], index: 5, kind: input, shape index: {}]   ;;  %s767_s6 = inlined_call_operand.vmem [shape: f32[1,128], index: 6, kind: input, shape index: {}]   ;;  %s768_s7 = inlined_call_operand.vmem [shape: f32[1,128], index: 7, kind: input, shape index: {}]   ;;  %s769_s8 = inlined_call_operand.hbm [shape: f32[8,128], index: 8, kind: output, shape index: {}]  }
   0x1   :  { %14 = vsyncpa [#allocation6], 0 }
   0x2   :  { %15 = vsyncpa [#allocation9], 0 }
   0x3   :  { %16 = vsyncpa [#allocation4], 0  ;;  %s629_s27 = smov [#allocation5]  }
   0x4   :  { %s32_s28 = sshll.u32 %s629_s27, 4  ;;  %s33_s28 = int_to_ptr.vmem [resolvable:$true] %s32_s28 }
   0x5   :  { %s529_s29 = scalar_lea.vmem %s33_s28, 512  ;;  %p534_p1 = scmp.lt.s32.totalorder %s33_s28, %s33_s28 }
   0x6   :  { %p530_p0 = scmp.ne.s32.totalorder %s33_s28, %s529_s29  ;;  %p535_p2 = scmp.lt.s32.totalorder %s529_s29, %s529_s29 }
   0x8   :  { %p536_p3 = por %p535_p2, %p534_p1 }
   0xa   :  { %p537_p4 = pnand %p536_p3, %p530_p0 }
   0xc   :  { %540 = shalt.err (!%p537_p4)
}
   0xd   :  { %s630_s30 = smov 128   ;;  %s631_s9 = smov 8  }
   0xe   :  { %38 = dma.hbm_to_vmem [thread:$0]  %s762_s1, 512, %s33_s28, [#allocation6], %s630_s30, %s630_s30, %s631_s9  }
   0xf   :  { %s632_s12 = smov [#allocation2]   ;;  %s633_s14 = smov [#allocation7]  }
  0x10   :  { %s23_s13 = sshll.u32 %s632_s12, 4  ;;  %s46_s15 = sshll.u32 %s633_s14, 4  ;;  %s24_s13 = int_to_ptr.vmem [resolvable:$true] %s23_s13  ;;  %s47_s15 = int_to_ptr.vmem [resolvable:$true] %s46_s15 }
  0x11   :  { %s549_s16 = scalar_lea.vmem %s24_s13, 128  ;;  %p554_p6 = scmp.lt.s32.totalorder %s24_s13, %s24_s13 }
  0x12   :  { %p550_p5 = scmp.ne.s32.totalorder %s24_s13, %s549_s16  ;;  %p555_p7 = scmp.lt.s32.totalorder %s549_s16, %s549_s16 }
  0x14   :  { %p556_p8 = por %p555_p7, %p554_p6 }
  0x16   :  { %p557_p9 = pnand %p556_p8, %p550_p5 }
  0x18   :  { %560 = shalt.err (!%p557_p9)
}
  0x19   :  { %26 = dma.hbm_to_vmem [thread:$0]  %s761_s0, 128, %s24_s13, [#allocation3]  }
  0x1a   :  { %s569_s19 = scalar_lea.vmem %s47_s15, 2048  ;;  %p574_p11 = scmp.lt.s32.totalorder %s47_s15, %s47_s15 }
  0x1b   :  { %p570_p10 = scmp.ne.s32.totalorder %s47_s15, %s569_s19  ;;  %p575_p12 = scmp.lt.s32.totalorder %s569_s19, %s569_s19 }
  0x1d   :  { %p576_p13 = por %p575_p12, %p574_p11 }
  0x1f   :  { %p577_p0 = pnand %p576_p13, %p570_p10 }
  0x21   :  { %580 = shalt.err (!%p577_p0)
}
  0x22   :  { %52 = dma.hbm_to_vmem [thread:$0]  %s764_s3, 2048, %s47_s15, [#allocation6], %s630_s30, %s630_s30, %s631_s9  }
  0x23   :  { %s634_s21 = smov [#allocation8]  }
  0x24   :  { %s60_s22 = sshll.u32 %s634_s21, 4  ;;  %s61_s22 = int_to_ptr.vmem [resolvable:$true] %s60_s22 }
  0x25   :  { %s589_s23 = scalar_lea.vmem %s61_s22, 2048  ;;  %p594_p2 = scmp.lt.s32.totalorder %s61_s22, %s61_s22 }
  0x26   :  { %p590_p1 = scmp.ne.s32.totalorder %s61_s22, %s589_s23  ;;  %p595_p3 = scmp.lt.s32.totalorder %s589_s23, %s589_s23 }
  0x28   :  { %p596_p4 = por %p595_p3, %p594_p2 }
  0x2a   :  { %p597_p5 = pnand %p596_p4, %p590_p1 }
  0x2c   :  { %600 = shalt.err (!%p597_p5)
}
  0x2d   :  { %66 = dma.hbm_to_vmem [thread:$0]  %s766_s5, 2048, %s61_s22, [#allocation9], %s630_s30, %s630_s30, %s631_s9  }
  0x2e   :  { %621 = dma.done.wait [#allocation3], 128  }
  0x2f   :  { %622 = vsyncadd [#allocation3], 4294967168 }
  0x30   :  { %623 = dma.done.wait [#allocation6], 2560  }
  0x31   :  { %624 = vsyncadd [#allocation6], 4294964736 }
  0x32   :  { %625 = dma.done.wait [#allocation9], 2048  }
  0x33   :  { %626 = vsyncadd [#allocation9], 4294965248  ;;  %v635_v0 = vmov 0.0   ;;  %vm636_vm0 = vmmov 0   ;;  %v87_v1 = vld [vmem:[#allocation5 + $0x18] sm:$0xff]  ;;  %v86_v2 = vld [vmem:[#allocation5 + $0x10] sm:$0xff] }
  0x34   :  { %429 = vmatprep.subr.mxu0 %v635_v0  ;;  %437 = vmatprep.mubr.msk.f32.mxu0 %vm636_vm0, %v635_v0  ;;  %v185_v3 = vld [vmem:[#allocation7 + $0x78] sm:$0xff]  ;;  %v85_v4 = vld [vmem:[#allocation5 + $0x8] sm:$0xff]  ;;  %v184_v5 = vld [vmem:[#allocation7 + $0x70] sm:$0xff]  ;;  %vm95_vm1 = vcmask 261120   ;;  %s637_s30 = smov [#allocation10]  }
  0x35   :  { %440 = vmatprep.subr.mxu1 %v635_v0  ;;  %472 = vmatprep.mubr.msk.f32.mxu1 %vm636_vm0, %v635_v0  ;;  %v183_v6 = vld [vmem:[#allocation7 + $0x68] sm:$0xff]  ;;  %v84_v7 = vld [vmem:[#allocation5] sm:$0xff]  ;;  %v83_v8 = vld [vmem:[#allocation2] sm:$0xff]  ;;  %s374_s9 = sshll.u32 %s637_s30, 4  ;;  %s375_s9 = int_to_ptr.vmem [resolvable:$true] %s374_s9 }
  0x36   :  { %430 = vmatpush3.msra.mxu0 %v87_v1  ;;  %441 = vmatpush3.msra.mxu1 %v185_v3  ;;  %v182_v9 = vld [vmem:[#allocation7 + $0x60] sm:$0xff]  ;;  %v181_v10 = vld [vmem:[#allocation7 + $0x58] sm:$0xff]  ;;  %v180_v11 = vld [vmem:[#allocation7 + $0x50] sm:$0xff]  ;;  %p606_p7 = scmp.lt.s32.totalorder %s375_s9, %s375_s9 }
  0x37   :  { %431 = vmatprep.subr.mxu0 %v635_v0  ;;  %442 = vmatprep.subr.mxu1 %v635_v0  ;;  %v179_v12 = vld [vmem:[#allocation7 + $0x48] sm:$0xff]  ;;  %v178_v13 = vld [vmem:[#allocation7 + $0x40] sm:$0xff]  ;;  %v177_v14 = vld [vmem:[#allocation7 + $0x38] sm:$0xff] }
  0x38   :  { %432 = vmatpush3.msra.mxu0 %v86_v2  ;;  %443 = vmatpush3.msra.mxu1 %v184_v5  ;;  %v176_v15 = vld [vmem:[#allocation7 + $0x30] sm:$0xff]  ;;  %v175_v16 = vld [vmem:[#allocation7 + $0x28] sm:$0xff]  ;;  %v174_v17 = vld [vmem:[#allocation7 + $0x20] sm:$0xff] }
  0x39   :  { %433 = vmatprep.subr.mxu0 %v635_v0  ;;  %444 = vmatprep.subr.mxu1 %v635_v0  ;;  %v173_v18 = vld [vmem:[#allocation7 + $0x18] sm:$0xff]  ;;  %v172_v19 = vld [vmem:[#allocation7 + $0x10] sm:$0xff]  ;;  %v171_v20 = vld [vmem:[#allocation7 + $0x8] sm:$0xff] }
  0x3a   :  { %434 = vmatpush3.msra.mxu0 %v85_v4  ;;  %445 = vmatpush3.msra.mxu1 %v183_v6  ;;  %v170_v21 = vld [vmem:[#allocation7] sm:$0xff]  ;;  %v279_v22 = vld [vmem:[#allocation8 + $0x78] sm:$0xff]  ;;  %v278_v23 = vld [vmem:[#allocation8 + $0x70] sm:$0xff] }
  0x3b   :  { %435 = vmatprep.subr.mxu0 %v635_v0  ;;  %446 = vmatprep.subr.mxu1 %v635_v0  ;;  %v277_v24 = vld [vmem:[#allocation8 + $0x68] sm:$0xff]  ;;  %v276_v25 = vld [vmem:[#allocation8 + $0x60] sm:$0xff]  ;;  %v275_v26 = vld [vmem:[#allocation8 + $0x58] sm:$0xff] }
  0x3c   :  { %436 = vmatpush3.msra.mxu0 %v84_v7  ;;  %447 = vmatpush3.msra.mxu1 %v182_v9  ;;  %v274_v27 = vld [vmem:[#allocation8 + $0x50] sm:$0xff]  ;;  %v273_v28 = vld [vmem:[#allocation8 + $0x48] sm:$0xff]  ;;  %v272_v29 = vld [vmem:[#allocation8 + $0x40] sm:$0xff] }
  0x3d   :  { %438 = vmatmul.mubr.msk.f32.vlgmr.msra.gmra.mxu0 %vm95_vm1, %v83_v8  ;;  %448 = vmatprep.subr.mxu1 %v635_v0  ;;  %v271_v30 = vld [vmem:[#allocation8 + $0x38] sm:$0xff]  ;;  %v270_v31 = vld [vmem:[#allocation8 + $0x30] sm:$0xff]  ;;  %v269_v32 = vld [vmem:[#allocation8 + $0x28] sm:$0xff] }
  0x3e   :  { %475 = vmatprep.subr.mxu0 %v635_v0  ;;  %449 = vmatpush3.msra.mxu1 %v181_v10  ;;  %v268_v33 = vld [vmem:[#allocation8 + $0x20] sm:$0xff]  ;;  %v267_v34 = vld [vmem:[#allocation8 + $0x18] sm:$0xff]  ;;  %v266_v40 = vld [vmem:[#allocation8 + $0x10] sm:$0xff] }
  0x3f   :  { %507 = vmatprep.mubr.msk.f32.mxu0 %vm636_vm0, %v635_v0  ;;  %450 = vmatprep.subr.mxu1 %v635_v0  ;;  %v385_v35 = vld [vmem:[%s763_s2] ss:$0 sm:$0xff]  ;;  %v265_v41 = vld [vmem:[#allocation8 + $0x8] sm:$0xff]  ;;  %v264_v42 = vld [vmem:[#allocation8] sm:$0xff] }
  0x40   :  { %451 = vmatpush3.msra.mxu1 %v180_v11  ;;  %476 = vmatpush3.msra.mxu0 %v279_v22  ;;  %v387_v43 = vld [vmem:[%s765_s4] ss:$0 sm:$0xff]  ;;  %s601_s4 = scalar_lea.vmem %s375_s9, 128 }
  0x41   :  { %452 = vmatprep.subr.mxu1 %v635_v0  ;;  %477 = vmatprep.subr.mxu0 %v635_v0  ;;  %v388_v49 = vld [vmem:[%s767_s6] ss:$0 sm:$0xff]  ;;  %p602_p6 = scmp.ne.s32.totalorder %s375_s9, %s601_s4  ;;  %p607_p8 = scmp.lt.s32.totalorder %s601_s4, %s601_s4 }
  0x42   :  { %453 = vmatpush3.msra.mxu1 %v179_v12  ;;  %478 = vmatpush3.msra.mxu0 %v278_v23  ;;  %v389_v50 = vld [vmem:[%s768_s7] ss:$0 sm:$0xff] }
  0x43   :  { %454 = vmatprep.subr.mxu1 %v635_v0  ;;  %479 = vmatprep.subr.mxu0 %v635_v0  ;;  %p608_p9 = por %p607_p8, %p606_p7 }
  0x44   :  { %455 = vmatpush3.msra.mxu1 %v178_v13  ;;  %480 = vmatpush3.msra.mxu0 %v277_v24 }
  0x45   :  { %456 = vmatprep.subr.mxu1 %v635_v0  ;;  %481 = vmatprep.subr.mxu0 %v635_v0  ;;  %p609_p10 = pnand %p608_p9, %p602_p6 }
  0x46   :  { %457 = vmatpush3.msra.mxu1 %v177_v14  ;;  %482 = vmatpush3.msra.mxu0 %v276_v25 }
  0x47   :  { %458 = vmatprep.subr.mxu1 %v635_v0  ;;  %483 = vmatprep.subr.mxu0 %v635_v0 }
  0x48   :  { %459 = vmatpush3.msra.mxu1 %v176_v15  ;;  %484 = vmatpush3.msra.mxu0 %v275_v26 }
  0x49   :  { %460 = vmatprep.subr.mxu1 %v635_v0  ;;  %485 = vmatprep.subr.mxu0 %v635_v0 }
  0x4a   :  { %461 = vmatpush3.msra.mxu1 %v175_v16  ;;  %486 = vmatpush3.msra.mxu0 %v274_v27 }
  0x4b   :  { %462 = vmatprep.subr.mxu1 %v635_v0  ;;  %487 = vmatprep.subr.mxu0 %v635_v0 }
  0x4c   :  { %463 = vmatpush3.msra.mxu1 %v174_v17  ;;  %488 = vmatpush3.msra.mxu0 %v273_v28 }
  0x4d   :  { %464 = vmatprep.subr.mxu1 %v635_v0  ;;  %489 = vmatprep.subr.mxu0 %v635_v0 }
  0x4e   :  { %465 = vmatpush3.msra.mxu1 %v173_v18  ;;  %490 = vmatpush3.msra.mxu0 %v272_v29 }
  0x4f   :  { %466 = vmatprep.subr.mxu1 %v635_v0  ;;  %491 = vmatprep.subr.mxu0 %v635_v0 }
  0x50   :  { %467 = vmatpush3.msra.mxu1 %v172_v19  ;;  %492 = vmatpush3.msra.mxu0 %v271_v30 }
  0x51   :  { %468 = vmatprep.subr.mxu1 %v635_v0  ;;  %493 = vmatprep.subr.mxu0 %v635_v0 }
  0x52   :  { %469 = vmatpush3.msra.mxu1 %v171_v20  ;;  %494 = vmatpush3.msra.mxu0 %v270_v31 }
  0x53   :  { %470 = vmatprep.subr.mxu1 %v635_v0  ;;  %495 = vmatprep.subr.mxu0 %v635_v0 }
  0x54   :  { %471 = vmatpush3.msra.mxu1 %v170_v21  ;;  %496 = vmatpush3.msra.mxu0 %v269_v32 }
  0x55   :  { %497 = vmatprep.subr.mxu0 %v635_v0 }
  0x56   :  { %498 = vmatpush3.msra.mxu0 %v268_v33 }
  0x57   :  { %499 = vmatprep.subr.mxu0 %v635_v0 }
  0x58   :  { %500 = vmatpush3.msra.mxu0 %v267_v34 }
  0x59   :  { %501 = vmatprep.subr.mxu0 %v635_v0 }
  0x5a   :  { %502 = vmatpush3.msra.mxu0 %v266_v40 }
  0x5b   :  { %503 = vmatprep.subr.mxu0 %v635_v0 }
  0x5c   :  { %504 = vmatpush3.msra.mxu0 %v265_v41 }
  0x5d   :  { %505 = vmatprep.subr.mxu0 %v635_v0 }
  0x5e   :  { %506 = vmatpush3.msra.mxu0 %v264_v42 }
  0xfd   :  { %v165_v36 = vpop.f32.mrf.mxu0 }
  0xfe   :  { %v166_v37 = vadd.f32 %v385_v35, %v165_v36 }
  0xff   :  { %v439_v38 = vpop.f32.mrf.mxu0 }
 0x100   :  { %v169_v39 = vmax.f32 %v166_v37, 0.0 }
 0x102   :  { %473 = vmatmul.mubr.f32.vlgmr.msra.gmra.mxu1 %v169_v39 }
 0x1c2   :  { %v259_v44 = vpop.f32.mrf.mxu1 }
 0x1c3   :  { %v260_v45 = vadd.f32 %v387_v43, %v259_v44 }
 0x1c4   :  { %v474_v46 = vpop.f32.mrf.mxu1 }
 0x1c5   :  { %v263_v47 = vmax.f32 %v260_v45, 0.0  ;;  %519 = vtanh.f32 %v260_v45 }
 0x1c7   :  { %508 = vmatmul.mubr.f32.vlgmr.msra.gmra.mxu0 %v263_v47 }
 0x1d2   :  { %v520_v48 = vpop.eup %519 }
 0x1d3   :  { %v365_v53 = vmul.f32 %v520_v48, %v389_v50 }
 0x287   :  { %v353_v51 = vpop.f32.mrf.mxu0 }
 0x288   :  { %v354_v52 = vadd.f32 %v388_v49, %v353_v51 }
 0x289   :  { %v509_v54 = vpop.f32.mrf.mxu0 }
 0x28a   :  { %v366_v55 = vadd.f32 %v365_v53, %v354_v52 }
 0x28c   :  { %367 = vst [vmem:[#allocation10] sm:$0xff] %v366_v55 }
 0x28d   :  { %612 = shalt.err (!%p609_p10)
}
 0x28e   :  { %377 = dma.vmem_to_hbm [thread:$0]  %s375_s9, 128, %s769_s8, [#allocation4]  }
 0x28f   :  { %627 = dma.done.wait [#allocation4], 128  }
 0x290   :  { %628 = vsyncadd [#allocation4], 4294967168 }
 0x291   :  { %381 = vsyncpa [#allocation3], 1 }
 0x292   :  { %382 = vsyncpa [#allocation6], 1 }
 0x293   :  { %383 = vsyncpa [#allocation9], 1 }
 0x294   :  { %384 = vsyncpa [#allocation4], 1 }

</bundles_post_ra>
